<compile_context>
chip_gen: v7x
topology: tpu7x:2x2x1
jax: 0.10.0
libtpu: 0.0.40
codegen_flags: <defaults>
</compile_context>

<pallas_src>
import functools
import math

import jax
import jax.numpy as jnp
from jax import lax
from jax.experimental import pallas as pl
from jax.experimental.pallas import tpu as pltpu

GAMMA = 2.0
ALPHA = 0.25
EPS = 1e-07


def _round_up(a, b):
    return (a + b - 1) // b * b


def _bf16_eup_default():
    """True on chips with a bf16 EUP path (v6e / v7x); False otherwise (v5e)."""
    try:
        kind = jax.devices()[0].device_kind.lower()
    except Exception:
        return False
    return any(tag in kind for tag in ("v6", "v7", "tpu7"))


def _focal_loss_kernel(x_ref, t_ref, o_ref, *, gamma, alpha, eps, n_valid,
                       samples_per_block, class_axis, exp_dtype):
    """One grid step: a logits slab + targets -> a (1, 128) partial sum.

    class_axis == 0: x_ref is (C, tile)  (class-major, samples on lanes)
    class_axis == 1: x_ref is (tile, C)  (row-major,   classes on lanes)
    """
    i = pl.program_id(0)
    sample_axis = 1 - class_axis

    x = x_ref[...].astype(jnp.float32)
    t = t_ref[...]                                   # int32, broadcastable to x

    # --- fused log-softmax over the class axis -------------------------------
    m = jnp.max(x, axis=class_axis, keepdims=True)
    xm = x - m                                       # reused below (<= 0)
    e = jnp.exp(xm.astype(exp_dtype))                # C exps / sample (EUP)
    s = jnp.sum(e.astype(jnp.float32), axis=class_axis, keepdims=True)
    log_s = jnp.log(s)                               # 1 log / sample

    # target-class shifted logit without a gather: one-hot compare + reduce.
    # NOTE: targets outside [0, C) silently select 0.0 (PyTorch's gather would
    # raise); callers using ignore-index sentinels must mask beforehand.
    cls = lax.broadcasted_iota(jnp.int32, x.shape, class_axis)
    xm_t = jnp.sum(jnp.where(cls == t, xm, 0.0), axis=class_axis, keepdims=True)

    # log p_t, with the module's clamp(p, eps, 1-eps) applied in log space
    # (log is monotonic, so this is equivalent).
    log_pt = jnp.clip(xm_t - log_s, math.log(eps), math.log1p(-eps))
    p_t = jnp.exp(log_pt)                            # 1 exp / sample (f32)

    one_minus_p = 1.0 - p_t
    g = float(gamma)
    if g.is_integer() and g >= 0:
        focal = one_minus_p ** int(g)                # integer_pow -> VPU muls
    else:
        focal = one_minus_p ** g                     # general (EUP) fallback

    loss = (-alpha) * log_pt * focal                 # (1, tile) or (tile, 1)

    # Mask the ragged last block (OOB lanes/rows hold unspecified data).
    pos = i * samples_per_block + lax.broadcasted_iota(jnp.int32, loss.shape,
                                                       sample_axis)
    loss = jnp.where(pos < n_valid, loss, 0.0)

    # One cross-lane/sublane reduce per block (amortized over `tile` samples);
    # broadcast the partial sum across the lane-dense (1, 128) output tile.
    o_ref[...] = jnp.full((1, 128), jnp.sum(loss), dtype=jnp.float32)


def focal_loss(x, target, *, gamma=GAMMA, alpha=ALPHA, eps=EPS, reduction=None,
               max_samples_per_block=8192,
               vmem_budget_bytes=8 * 1024 * 1024,
               fast_exp=None):
    """Pallas focal loss.

    x: (N, C) float (f32 or bf16), target: (N,) integer class indices.
    Matches the PyTorch module: truthy `reduction` -> loss.sum(), else
    loss.mean() over all N*C elements.
    """
    N, C = x.shape
    if fast_exp is None:
        fast_exp = _bf16_eup_default()
    exp_dtype = jnp.bfloat16 if fast_exp else jnp.float32
    dtype_bytes = jnp.dtype(x.dtype).itemsize

    # Wide class counts are already lane-dense in row-major (N, C): ingest
    # directly (no transpose => one full HBM pass saved).  Small C keeps the
    # class-major (C, N) layout so classes sit on sublanes and samples fill
    # the 128-lane axis (row-major would waste 128/C of every vreg).
    classes_on_lanes = C >= 128
    align = 8 if classes_on_lanes else 128           # sublane vs lane tiling

    # VMEM-aware sample tile: double-buffered logits slab within budget.
    tile = int(max_samples_per_block)
    tile = min(tile, max(1, vmem_budget_bytes // (2 * C * dtype_bytes)))
    # Keep >= 2 grid blocks when N allows so ("parallel",) feeds both v7x TCs.
    tile = min(tile, _round_up(pl.cdiv(N, 2), align))
    tile = max(align, tile // align * align)

    if tile >= N:
        tile, num_blocks = N, 1                      # single full-extent block
    else:
        num_blocks = pl.cdiv(N, tile)

    tgt = target.astype(jnp.int32)
    if classes_on_lanes:
        x_in = x                                     # (N, C) as-is, no copy
        t_in = tgt.reshape(N, 1)
        x_spec = pl.BlockSpec((tile, C), lambda i: (i, 0))
        t_spec = pl.BlockSpec((tile, 1), lambda i: (i, 0))
        class_axis = 1
    else:
        # TODO(synk): for small C the producer should emit class-major (C, N)
        # logits so this transpose (one extra HBM read+write) disappears.
        x_in = jnp.transpose(x)                      # (C, N)
        t_in = tgt.reshape(1, N)
        x_spec = pl.BlockSpec((C, tile), lambda i: (0, i))
        t_spec = pl.BlockSpec((1, tile), lambda i: (0, i))
        class_axis = 0

    kernel = functools.partial(
        _focal_loss_kernel, gamma=gamma, alpha=alpha, eps=eps, n_valid=N,
        samples_per_block=tile, class_axis=class_axis, exp_dtype=exp_dtype)

    partials = pl.pallas_call(
        kernel,
        out_shape=jax.ShapeDtypeStruct((1, num_blocks * 128), jnp.float32),
        grid_spec=pltpu.PrefetchScalarGridSpec(
            num_scalar_prefetch=0,
            grid=(num_blocks,),
            in_specs=[x_spec, t_spec],
            out_specs=pl.BlockSpec((1, 128), lambda i: (0, i)),
        ),
        compiler_params=pltpu.CompilerParams(
            # independent per-block partial sums -> both TCs usable on v7x
            dimension_semantics=("parallel",)),
    )(x_in, t_in)

    # tiny final reduction in JAX (num_blocks f32 values)
    total = jnp.sum(partials.reshape(num_blocks, 128)[:, 0])

    if reduction:                          # module semantics: truthy -> sum
        return total
    return total / jnp.float32(N * C)      # loss.mean() over all N*C elements


def _reference(x, target, gamma=GAMMA, alpha=ALPHA, eps=EPS):
    """Pure-JAX replica of the PyTorch module's per-element loss tensor."""
    p = jax.nn.softmax(x.astype(jnp.float32), axis=-1)
    p = jnp.clip(p, eps, 1.0 - eps)
    y = jax.nn.one_hot(target, x.shape[-1], dtype=jnp.float32)
    return alpha * (-y * jnp.log(p)) * (1.0 - p) ** gamma


if __name__ == "__main__":
    key = jax.random.PRNGKey(0)
    kx, kt, kx2, kt2 = jax.random.split(key, 4)

    # 1) Small-C path (class-major, samples on lanes), exact f32 exponentials.
    N1, C1 = 64, 16
    x1 = jax.random.normal(kx, (N1, C1), dtype=jnp.float32)
    t1 = jax.random.randint(kt, (N1,), 0, C1, dtype=jnp.int32)
    ref1 = _reference(x1, t1)

    out_mean = jax.block_until_ready(focal_loss(x1, t1, fast_exp=False))
    out_sum = jax.block_until_ready(
        focal_loss(x1, t1, reduction="sum", fast_exp=False))
    assert jnp.allclose(out_mean, jnp.mean(ref1), rtol=1e-5, atol=1e-6), (
        out_mean, jnp.mean(ref1))
    assert jnp.allclose(out_sum, jnp.sum(ref1), rtol=1e-5, atol=1e-4), (
        out_sum, jnp.sum(ref1))

    # 2) Wide-C path (row-major, no transpose) with a ragged last block.
    N2, C2 = 200, 128
    x2 = jax.random.normal(kx2, (N2, C2), dtype=jnp.float32)
    t2 = jax.random.randint(kt2, (N2,), 0, C2, dtype=jnp.int32)
    ref2 = _reference(x2, t2)
    out2 = jax.block_until_ready(focal_loss(x2, t2, fast_exp=False))
    assert jnp.allclose(out2, jnp.mean(ref2), rtol=1e-5, atol=1e-6), (
        out2, jnp.mean(ref2))

    # 3) Auto fast-exp path (bf16 EUP exps on v6e/v7x, f32 elsewhere) —
    #    loose tolerance covers the bf16 denominator rounding.
    out_fast = jax.block_until_ready(focal_loss(x1, t1))
    assert jnp.allclose(out_fast, jnp.mean(ref1), rtol=3e-2, atol=1e-5), (
        out_fast, jnp.mean(ref1))

    print("KERNEL_OK")
</pallas_src>

<mosaic_0001>
module attributes {stable_mosaic.version = 11 : i64} {
  func.func @_focal_loss_kernel(%arg0: i32, %arg1: memref<16x64xf32, #tpu.memory_space<vmem>>, %arg2: memref<1x64xi32, #tpu.memory_space<vmem>>, %arg3: memref<1x128xf32, #tpu.memory_space<vmem>>) attributes {dimension_semantics = [#tpu.dimension_semantics<parallel>], iteration_bounds = array<i64: 1>, scalar_prefetch = 0 : i64, scratch_operands = 0 : i64, tpu.core_type = #tpu.core_type<tc>, window_params = [{transform_indices = @transform_0, window_bounds = array<i64: 16, 64>}, {transform_indices = @transform_1, window_bounds = array<i64: 1, 64>}, {transform_indices = @transform_2, window_bounds = array<i64: 1, 128>}]} {
    %c0 = arith.constant 0 : index
    %c0_0 = arith.constant 0 : index
    %0 = vector.load %arg1[%c0, %c0_0] : memref<16x64xf32, #tpu.memory_space<vmem>>, vector<16x64xf32>
    %c0_1 = arith.constant 0 : index
    %c0_2 = arith.constant 0 : index
    %1 = vector.load %arg2[%c0_1, %c0_2] : memref<1x64xi32, #tpu.memory_space<vmem>>, vector<1x64xi32>
    %cst = arith.constant dense<0xFF800000> : vector<64xf32>
    %2 = vector.multi_reduction <maximumf>, %0, %cst [0] : vector<16x64xf32> to vector<64xf32>
    %3 = vector.shape_cast %2 : vector<64xf32> to vector<1x64xf32>
    %4 = vector.broadcast %3 : vector<1x64xf32> to vector<16x64xf32>
    %5 = arith.subf %0, %4 : vector<16x64xf32>
    %6 = math.exp %5 : vector<16x64xf32>
    %cst_3 = arith.constant dense<0.000000e+00> : vector<64xf32>
    %7 = vector.multi_reduction <add>, %6, %cst_3 [0] : vector<16x64xf32> to vector<64xf32>
    %8 = vector.shape_cast %7 : vector<64xf32> to vector<1x64xf32>
    %9 = math.log %8 : vector<1x64xf32>
    %10 = tpu.iota {dimensions = array<i32: 0>} : vector<16x64xi32>
    %11 = vector.broadcast %1 : vector<1x64xi32> to vector<16x64xi32>
    %12 = arith.cmpi eq, %10, %11 : vector<16x64xi32>
    %cst_4 = arith.constant 0.000000e+00 : f32
    %13 = vector.broadcast %cst_4 : f32 to vector<16x64xf32>
    %14 = arith.select %12, %5, %13 : vector<16x64xi1>, vector<16x64xf32>
    %cst_5 = arith.constant dense<0.000000e+00> : vector<64xf32>
    %15 = vector.multi_reduction <add>, %14, %cst_5 [0] : vector<16x64xf32> to vector<64xf32>
    %16 = vector.shape_cast %15 : vector<64xf32> to vector<1x64xf32>
    %17 = arith.subf %16, %9 : vector<1x64xf32>
    %cst_6 = arith.constant -16.1180954 : f32
    %cst_7 = arith.constant -1.00000008E-7 : f32
    %18 = vector.broadcast %cst_6 : f32 to vector<1x64xf32>
    %19 = arith.maximumf %18, %17 : vector<1x64xf32>
    %20 = vector.broadcast %cst_7 : f32 to vector<1x64xf32>
    %21 = arith.minimumf %20, %19 : vector<1x64xf32>
    %22 = math.exp %21 : vector<1x64xf32>
    %cst_8 = arith.constant 1.000000e+00 : f32
    %23 = vector.broadcast %cst_8 : f32 to vector<1x64xf32>
    %24 = arith.subf %23, %22 : vector<1x64xf32>
    %25 = arith.mulf %24, %24 : vector<1x64xf32>
    %cst_9 = arith.constant -2.500000e-01 : f32
    %26 = vector.broadcast %cst_9 : f32 to vector<1x64xf32>
    %27 = arith.mulf %26, %21 : vector<1x64xf32>
    %28 = arith.mulf %27, %25 : vector<1x64xf32>
    %c64_i32 = arith.constant 64 : i32
    %29 = arith.muli %arg0, %c64_i32 : i32
    %30 = tpu.iota {dimensions = array<i32: 1>} : vector<1x64xi32>
    %31 = vector.broadcast %29 : i32 to vector<1x64xi32>
    %32 = arith.addi %31, %30 : vector<1x64xi32>
    %c64_i32_10 = arith.constant 64 : i32
    %33 = vector.broadcast %c64_i32_10 : i32 to vector<1x64xi32>
    %34 = arith.cmpi slt, %32, %33 : vector<1x64xi32>
    %cst_11 = arith.constant 0.000000e+00 : f32
    %35 = vector.broadcast %cst_11 : f32 to vector<1x64xf32>
    %36 = arith.select %34, %28, %35 : vector<1x64xi1>, vector<1x64xf32>
    %37 = vector.shape_cast %36 : vector<1x64xf32> to vector<1x1x64xf32>
    %cst_12 = arith.constant dense<0.000000e+00> : vector<1xf32>
    %38 = vector.multi_reduction <add>, %37, %cst_12 [1, 2] : vector<1x1x64xf32> to vector<1xf32>
    %39 = vector.shape_cast %38 : vector<1xf32> to vector<1x1x1xf32>
    %40 = vector.extract %39[0, 0, 0] : f32 from vector<1x1x1xf32>
    %41 = vector.broadcast %40 : f32 to vector<1x128xf32>
    %c0_13 = arith.constant 0 : index
    %c0_14 = arith.constant 0 : index
    %42 = vector.load %arg3[%c0_13, %c0_14] : memref<1x128xf32, #tpu.memory_space<vmem>>, vector<1x128xf32>
    tpu.vector_store %arg3[%c0_13, %c0_14], %41 {strides = array<i32>} : memref<1x128xf32, #tpu.memory_space<vmem>>, vector<1x128xf32>,
    return
  }
  func.func @transform_0(%arg0: i32) -> (i32, i32) {
    %c0_i32 = arith.constant 0 : i32
    %c0_i32_0 = arith.constant 0 : i32
    return %c0_i32, %arg0 : i32, i32
  }
  func.func @transform_1(%arg0: i32) -> (i32, i32) {
    %c0_i32 = arith.constant 0 : i32
    %c0_i32_0 = arith.constant 0 : i32
    return %c0_i32, %arg0 : i32, i32
  }
  func.func @transform_2(%arg0: i32) -> (i32, i32) {
    %c0_i32 = arith.constant 0 : i32
    %c0_i32_0 = arith.constant 0 : i32
    return %c0_i32, %arg0 : i32, i32
  }
}

</mosaic_0001>

<bundles_post_ra>
// kernel: tpu_custom_call.1
= control target key start
LH: loop header
LB: loop body
LE: loop exit
PB: predicated region body
PF: predicated region fallthrough
CT: control target
= control target key end

     0   :  { %7 = vsyncpa [#allocation3], 0  ;;  %s235_s0 = inlined_call_operand.hbm [shape: f32[16,64], index: 0, kind: input, shape index: {}]   ;;  %s236_s1 = inlined_call_operand.vmem [shape: s32[1,64], index: 1, kind: input, shape index: {}]   ;;  %s237_s2 = inlined_call_operand.hbm [shape: f32[1,128], index: 2, kind: output, shape index: {}]  }
   0x1   :  { %8 = vsyncpa [#allocation4], 0  ;;  %s183_s9 = smov [#allocation2]   ;;  %s135_s13 = scalar_lea.hbm %s235_s0, 256 }
   0x2   :  { %s14_s10 = sshll.u32 %s183_s9, 4  ;;  %p136_p0 = scmp.ne.s32.totalorder %s235_s0, %s135_s13  ;;  %s15_s10 = int_to_ptr.vmem [resolvable:$true] %s14_s10 }
   0x3   :  { %p139_p1 = scmp.lt.u32.totalorder %s135_s13, %s235_s0 }
   0x5   :  { %p141_p2 = pnand %p139_p1, %p136_p0 }
   0x7   :  { %144 = shalt.err (!%p141_p2)
}
   0x8   :  { %s145_s18 = scalar_lea.vmem %s15_s10, 256  ;;  %p150_p4 = scmp.lt.s32.totalorder %s15_s10, %s15_s10 }
   0x9   :  { %p146_p3 = scmp.ne.s32.totalorder %s15_s10, %s145_s18  ;;  %p151_p5 = scmp.lt.s32.totalorder %s145_s18, %s145_s18 }
   0xb   :  { %p152_p6 = por %p151_p5, %p150_p4 }
   0xd   :  { %p153_p7 = pnand %p152_p6, %p146_p3 }
   0xf   :  { %156 = shalt.err (!%p153_p7)
}
  0x10   :  { %s184_s19 = smov 128   ;;  %s185_s20 = smov 8  }
  0x11   :  { %20 = dma.hbm_to_vmem [thread:$0]  %s235_s0, 256, %s15_s10, [#allocation3], %s184_s19, %s184_s19, %s185_s20  }
  0x12   :  { %179 = dma.done.wait [#allocation3], 256  }
  0x13   :  { %180 = vsyncadd [#allocation3], 4294967040  ;;  %vm29_vm0 = vcmask 523264   ;;  %v26_v0 = vld [vmem:[#allocation2] sm:$0xff]  ;;  %v27_v1 = vld [vmem:[#allocation2 + $0x8] sm:$0xff]  ;;  %v56_v9 = vlaneseq  ;;  %vm92_vm4 = vcmask 516096  }
  0x14   :  { %v30_v2 = vsel %vm29_vm0, %v26_v0, -inf  ;;  %v31_v3 = vsel %vm29_vm0, %v27_v1, -inf  ;;  %v120_v18 = vld [vmem:[%s236_s1] ss:$0 sm:$0xff]  ;;  %s186_s1 = smov [#allocation5]  }
  0x15   :  { %v32_v4 = vmax.f32 %v30_v2, %v31_v3  ;;  %v57_v12 = vshrl.u32 %v56_v9, 7  ;;  %v87_v48 = vand.u32 127, %v56_v9  ;;  %s111_s24 = sshll.u32 %s186_s1, 4  ;;  %s112_s24 = int_to_ptr.vmem [resolvable:$true] %s111_s24 }
  0x16   :  { %s157_s26 = scalar_lea.vmem %s112_s24, 16  ;;  %s161_s27 = scalar_lea.vmem %s112_s24, 32 }
  0x17   :  { %v33_v5 = vrot.slane %v32_v4, 4  ;;  %v58_v17 = vadd.s32 8, %v57_v12  ;;  %vm63_vm1 = vcmp.eq.s32.totalorder %v57_v12, %v120_v18  ;;  %vm90_vm3 = vcmp.lt.s32.totalorder %v87_v48, 64  ;;  %p158_p8 = scmp.ne.s32.totalorder %s112_s24, %s157_s26  ;;  %p162_p9 = scmp.lt.s32.totalorder %s112_s24, %s112_s24 }
  0x18   :  { %p163_p10 = scmp.lt.s32.totalorder %s161_s27, %s157_s26 }
  0x19   :  { %v34_v6 = vmax.f32 %v32_v4, %v33_v5  ;;  %vm64_vm2 = vcmp.eq.s32.totalorder %v58_v17, %v120_v18 }
  0x1a   :  { %p164_p11 = por %p163_p10, %p162_p9 }
  0x1b   :  { %v35_v7 = vrot.slane %v34_v6, 2 }
  0x1c   :  { %p165_p12 = pnand %p164_p11, %p158_p8 }
  0x1d   :  { %v36_v8 = vmax.f32 %v34_v6, %v35_v7 }
  0x1f   :  { %v37_v10 = vrot.slane %v36_v8, 1 }
  0x21   :  { %v38_v11 = vmax.f32 %v36_v8, %v37_v10 }
  0x23   :  { %v39_v13 = vsub.f32 %v26_v0, %v38_v11  ;;  %v40_v14 = vsub.f32 %v27_v1, %v38_v11 }
  0x25   :  { %v41_v15 = vmul.f32 1.442695, %v39_v13  ;;  %v43_v16 = vmul.f32 1.442695, %v40_v14  ;;  %v65_v19 = vsel %vm63_vm1, %v39_v13, 0.0  ;;  %v66_v20 = vsel %vm64_vm2, %v40_v14, 0.0 }
  0x26   :  { %v67_v21 = vsel %vm29_vm0, %v65_v19, 0.0  ;;  %v68_v22 = vsel %vm29_vm0, %v66_v20, 0.0 }
  0x27   :  { %127 = vpow2.f32 %v41_v15  ;;  %v69_v27 = vadd.f32 %v68_v22, %v67_v21 }
  0x28   :  { %129 = vpow2.f32 %v43_v16 }
  0x29   :  { %v70_v30 = vrot.slane %v69_v27, 4 }
  0x2b   :  { %v71_v33 = vadd.f32 %v70_v30, %v69_v27 }
  0x2d   :  { %v72_v36 = vrot.slane %v71_v33, 2 }
  0x2f   :  { %v73_v38 = vadd.f32 %v72_v36, %v71_v33 }
  0x31   :  { %v128_v23 = vpop.eup %127  ;;  %v74_v39 = vrot.slane %v73_v38, 1 }
  0x32   :  { %v130_v24 = vpop.eup %129  ;;  %v45_v25 = vsel %vm29_vm0, %v128_v23, 0.0 }
  0x33   :  { %v46_v26 = vsel %vm29_vm0, %v130_v24, 0.0  ;;  %v75_v40 = vadd.f32 %v74_v39, %v73_v38 }
  0x34   :  { %v47_v28 = vadd.f32 %v46_v26, %v45_v25 }
  0x36   :  { %v48_v29 = vrot.slane %v47_v28, 4 }
  0x38   :  { %v49_v31 = vadd.f32 %v48_v29, %v47_v28 }
  0x3a   :  { %v50_v32 = vrot.slane %v49_v31, 2 }
  0x3c   :  { %v51_v34 = vadd.f32 %v50_v32, %v49_v31 }
  0x3e   :  { %v52_v35 = vrot.slane %v51_v34, 1 }
  0x40   :  { %v53_v37 = vadd.f32 %v52_v35, %v51_v34 }
  0x42   :  { %131 = vlog2.f32 %v53_v37 }
  0x4c   :  { %v132_v41 = vpop.eup %131 }
  0x4d   :  { %v55_v42 = vmul.f32 0.6931472, %v132_v41 }
  0x4f   :  { %v76_v43 = vsub.f32 %v75_v40, %v55_v42 }
  0x51   :  { %v77_v44 = vmax.f32 %v76_v43, -16.118095 }
  0x53   :  { %v78_v45 = vmin.f32 %v77_v44, -1.0000001e-07 }
  0x55   :  { %v79_v46 = vmul.f32 1.442695, %v78_v45  ;;  %v83_v50 = vmul.f32 -0.25, %v78_v45 }
  0x57   :  { %133 = vpow2.f32 %v79_v46 }
  0x61   :  { %v134_v47 = vpop.eup %133 }
  0x62   :  { %v81_v49 = vsub.f32 1.0, %v134_v47 }
  0x64   :  { %v82_v51 = vmul.f32 %v81_v49, %v81_v49 }
  0x66   :  { %v84_v52 = vmul.f32 %v83_v50, %v82_v51 }
  0x68   :  { %v91_v53 = vsel %vm90_vm3, %v84_v52, 0.0 }
  0x69   :  { %v93_v54 = vsel %vm92_vm4, %v91_v53, 0.0 }
  0x6a   :  { %94 = vadd.xlane.f32.xlu0 %v93_v54 }
  0xf7   :  { %v95_v55 = vpop.xlane.xlu0 %94 }
  0xf8   :  { %v96_v56 = vrot.slane %v95_v55, 4 }
  0xfa   :  { %v97_v57 = vadd.f32 %v96_v56, %v95_v55 }
  0xfc   :  { %v98_v58 = vrot.slane %v97_v57, 2 }
  0xfe   :  { %v99_v59 = vadd.f32 %v98_v58, %v97_v57 }
 0x100   :  { %v100_v60 = vrot.slane %v99_v59, 1 }
 0x102   :  { %v101_v61 = vadd.f32 %v100_v60, %v99_v59 }
 0x104   :  { %121 = vpush %v101_v61 }
 0x135   :  { %s122_s25 = spop %121 }
 0x136   :  { %v103_v62 = vstv %s122_s25 }
 0x137   :  { %104 = vst [vmem:[#allocation5] sm:$0x1] %v103_v62 }
 0x138   :  { %168 = shalt.err (!%p165_p12)
}
 0x139   :  { %s169_s30 = scalar_lea.hbm %s237_s2, 16 }
 0x13a   :  { %p170_p13 = scmp.ne.s32.totalorder %s237_s2, %s169_s30  ;;  %p173_p0 = scmp.lt.u32.totalorder %s169_s30, %s237_s2 }
 0x13c   :  { %p175_p1 = pnand %p173_p0, %p170_p13 }
 0x13e   :  { %178 = shalt.err (!%p175_p1)
}
 0x13f   :  { %114 = dma.vmem_to_hbm [thread:$0]  %s112_s24, 16, %s237_s2, [#allocation4]  }
 0x140   :  { %181 = dma.done.wait [#allocation4], 16  }
 0x141   :  { %182 = vsyncadd [#allocation4], 4294967280 }
 0x142   :  { %118 = vsyncpa [#allocation3], 1 }
 0x143   :  { %119 = vsyncpa [#allocation4], 1 }

</bundles_post_ra>
